<compile_context>
chip_gen: v6e
topology: v6e:2x2x1
jax: 0.10.0
libtpu: 0.0.40
codegen_flags: <defaults>
</compile_context>

<pallas_src>
import functools

import jax
import jax.numpy as jnp
from jax.experimental import pallas as pl
from jax.experimental.pallas import tpu as pltpu


def _round_up(x, m):
    return ((x + m - 1) // m) * m


def encoder_kernel(frames_ref, w_ref, b_ref, o_ref):
    # Single fused MXU push: (tm, K_long) @ (K_long, Cpad), +bias, ReLU.
    acc = jnp.dot(frames_ref[...], w_ref[...], preferred_element_type=jnp.float32)
    o_ref[...] = jnp.maximum(acc + b_ref[...], 0.0).astype(o_ref.dtype)


def encoder_block(audio, params, *, short_window_len, middle_window_len,
                  long_window_len, tm=1024, out_dtype=jnp.float32):
    """params = (w1, b1, w2, b2, w3, b3); w_i: (K_i, C), b_i: (1, C)."""
    B, cin, T = audio.shape
    assert cin == 1, "Conv1d in_channels is 1"
    K = long_window_len
    stride = short_window_len // 2
    L3 = (T - K) // stride + 1                    # frames surviving the trim
    M = B * L3

    # ---- fused weight / bias construction (runs inside the same jit) -------
    w1, b1, w2, b2, w3, b3 = params
    C = w1.shape[1]
    w1p = jnp.pad(w1, ((0, K - short_window_len), (0, 0)))   # short = prefix
    w2p = jnp.pad(w2, ((0, K - middle_window_len), (0, 0)))  # middle = prefix
    wcat = jnp.concatenate([w1p, w2p, w3], axis=1)           # (K, 3C)
    bcat = jnp.concatenate([b1, b2, b3], axis=1)             # (1, 3C)
    Cpad = _round_up(3 * C, 128)                             # lane-dense output
    wcat = jnp.pad(wcat, ((0, 0), (0, Cpad - 3 * C)))
    bcat = jnp.pad(bcat, ((0, 0), (0, Cpad - 3 * C)))

    # ---- framing (glue: gather + reshape in plain JAX, fused under jit) ----
    a = audio[:, 0, :]                                                   # (B, T)
    idx = stride * jnp.arange(L3)[:, None] + jnp.arange(K)[None, :]
    frames = a[:, idx].reshape(M, K)                                     # (M, K)

    tm_eff = min(tm, _round_up(M, 8))             # big tiles, multiple of 8
    Mp = _round_up(M, tm_eff)
    frames = jnp.pad(frames, ((0, Mp - M), (0, 0)))

    out = pl.pallas_call(
        encoder_kernel,
        out_shape=jax.ShapeDtypeStruct((Mp, Cpad), out_dtype),
        grid_spec=pltpu.PrefetchScalarGridSpec(
            num_scalar_prefetch=0,
            grid=(Mp // tm_eff,),
            in_specs=[pl.BlockSpec((tm_eff, K), lambda i: (i, 0)),
                      pl.BlockSpec((K, Cpad), lambda i: (0, 0)),
                      pl.BlockSpec((1, Cpad), lambda i: (0, 0))],
            out_specs=pl.BlockSpec((tm_eff, Cpad), lambda i: (i, 0))),
        compiler_params=pltpu.CompilerParams(
            dimension_semantics=("parallel",)),
    )(frames, wcat, bcat)

    def to_ncl(o):                               # (Mp, C) -> (B, C, L3)
        return jnp.transpose(o[:M].reshape(B, L3, C), (0, 2, 1))

    return (to_ncl(out[:, 0:C]),
            to_ncl(out[:, C:2 * C]),
            to_ncl(out[:, 2 * C:3 * C]))


def _reference(audio, torch_weights, *, short_window_len, middle_window_len,
               long_window_len):
    """Pure-JAX reference matching torch.nn.Conv1d + ReLU + trim."""
    stride = short_window_len // 2
    dn = jax.lax.conv_dimension_numbers(audio.shape, torch_weights[0][0].shape,
                                        ('NCH', 'OIH', 'NCH'))

    def conv(w, b):
        y = jax.lax.conv_general_dilated(audio, w, (stride,), 'VALID',
                                         dimension_numbers=dn)
        return jnp.maximum(y + b[None, :, None], 0.0)

    (w1, b1), (w2, b2), (w3, b3) = torch_weights
    x1, x2, x3 = conv(w1, b1), conv(w2, b2), conv(w3, b3)
    L3 = x3.shape[-1]
    return x1[:, :, :L3], x2[:, :, :L3], x3


if __name__ == "__main__":
    # Module hyper-parameters (small, consistent with the forward pass).
    short_window_len, middle_window_len, long_window_len = 4, 8, 16
    decoder_dim = 32
    B, T = 2, 64

    key = jax.random.PRNGKey(0)
    k_a, k1, k2, k3, kb1, kb2, kb3 = jax.random.split(key, 7)

    audio = jax.random.normal(k_a, (B, 1, T), dtype=jnp.float32)

    # Deterministic synthetic parameters (torch layout: (C_out, 1, K)).
    def make_w(k, K):
        return 0.1 * jax.random.normal(k, (decoder_dim, 1, K), dtype=jnp.float32)

    w1_t, w2_t, w3_t = (make_w(k1, short_window_len),
                        make_w(k2, middle_window_len),
                        make_w(k3, long_window_len))
    b1 = 0.05 * jax.random.normal(kb1, (decoder_dim,), dtype=jnp.float32)
    b2 = 0.05 * jax.random.normal(kb2, (decoder_dim,), dtype=jnp.float32)
    b3 = 0.05 * jax.random.normal(kb3, (decoder_dim,), dtype=jnp.float32)

    # Kernel-layout params: W as (K, C), bias as (1, C).
    params = (w1_t[:, 0, :].T, b1[None, :],
              w2_t[:, 0, :].T, b2[None, :],
              w3_t[:, 0, :].T, b3[None, :])

    run = jax.jit(functools.partial(
        encoder_block,
        short_window_len=short_window_len,
        middle_window_len=middle_window_len,
        long_window_len=long_window_len))

    x1, x2, x3 = run(audio, params)
    jax.block_until_ready((x1, x2, x3))

    r1, r2, r3 = _reference(
        audio, ((w1_t, b1), (w2_t, b2), (w3_t, b3)),
        short_window_len=short_window_len,
        middle_window_len=middle_window_len,
        long_window_len=long_window_len)

    assert x1.shape == r1.shape and x2.shape == r2.shape and x3.shape == r3.shape
    for got, ref in ((x1, r1), (x2, r2), (x3, r3)):
        assert jnp.allclose(got, ref, atol=1e-5, rtol=1e-5), "mismatch vs reference"

    print("KERNEL_OK")
</pallas_src>

<mosaic_0001>
module attributes {stable_mosaic.version = 11 : i64} {
  func.func @encoder_kernel(%arg0: i32, %arg1: memref<56x16xf32, #tpu.memory_space<vmem>>, %arg2: memref<16x128xf32, #tpu.memory_space<vmem>>, %arg3: memref<1x128xf32, #tpu.memory_space<vmem>>, %arg4: memref<56x128xf32, #tpu.memory_space<vmem>>) attributes {dimension_semantics = [#tpu.dimension_semantics<parallel>], iteration_bounds = array<i64: 1>, scalar_prefetch = 0 : i64, scratch_operands = 0 : i64, tpu.core_type = #tpu.core_type<tc>, window_params = [{transform_indices = @transform_0, window_bounds = array<i64: 56, 16>}, {pipeline_mode = #tpu.pipeline_mode<synchronous>, transform_indices = @transform_1, window_bounds = array<i64: 16, 128>}, {pipeline_mode = #tpu.pipeline_mode<synchronous>, transform_indices = @transform_2, window_bounds = array<i64: 1, 128>}, {transform_indices = @transform_3, window_bounds = array<i64: 56, 128>}]} {
    %c0 = arith.constant 0 : index
    %c0_0 = arith.constant 0 : index
    %0 = vector.load %arg1[%c0, %c0_0] : memref<56x16xf32, #tpu.memory_space<vmem>>, vector<56x16xf32>
    %c0_1 = arith.constant 0 : index
    %c0_2 = arith.constant 0 : index
    %1 = vector.load %arg2[%c0_1, %c0_2] : memref<16x128xf32, #tpu.memory_space<vmem>>, vector<16x128xf32>
    %cst = arith.constant dense<0.000000e+00> : vector<56x128xf32>
    %2 = tpu.matmul %0, %1, %cst {dimension_numbers = #tpu.dot_dimension_numbers<[1], [0], [0], [1], [0, 0, 1, 1], [], []>} : vector<56x16xf32>, vector<16x128xf32>, vector<56x128xf32> -> vector<56x128xf32>
    %c0_3 = arith.constant 0 : index
    %c0_4 = arith.constant 0 : index
    %3 = vector.load %arg3[%c0_3, %c0_4] : memref<1x128xf32, #tpu.memory_space<vmem>>, vector<1x128xf32>
    %4 = vector.broadcast %3 : vector<1x128xf32> to vector<56x128xf32>
    %5 = arith.addf %2, %4 : vector<56x128xf32>
    %cst_5 = arith.constant 0.000000e+00 : f32
    %6 = vector.broadcast %cst_5 : f32 to vector<56x128xf32>
    %7 = arith.maximumf %5, %6 : vector<56x128xf32>
    %c0_6 = arith.constant 0 : index
    %c0_7 = arith.constant 0 : index
    %8 = vector.load %arg4[%c0_6, %c0_7] : memref<56x128xf32, #tpu.memory_space<vmem>>, vector<56x128xf32>
    tpu.vector_store %arg4[%c0_6, %c0_7], %7 {strides = array<i32>} : memref<56x128xf32, #tpu.memory_space<vmem>>, vector<56x128xf32>,
    return
  }
  func.func @transform_0(%arg0: i32) -> (i32, i32) {
    %c0_i32 = arith.constant 0 : i32
    %c0_i32_0 = arith.constant 0 : i32
    return %arg0, %c0_i32 : i32, i32
  }
  func.func @transform_1(%arg0: i32) -> (i32, i32) {
    %c0_i32 = arith.constant 0 : i32
    %c0_i32_0 = arith.constant 0 : i32
    %c0_i32_1 = arith.constant 0 : i32
    return %c0_i32, %c0_i32_0 : i32, i32
  }
  func.func @transform_2(%arg0: i32) -> (i32, i32) {
    %c0_i32 = arith.constant 0 : i32
    %c0_i32_0 = arith.constant 0 : i32
    %c0_i32_1 = arith.constant 0 : i32
    return %c0_i32, %c0_i32_0 : i32, i32
  }
  func.func @transform_3(%arg0: i32) -> (i32, i32) {
    %c0_i32 = arith.constant 0 : i32
    %c0_i32_0 = arith.constant 0 : i32
    return %arg0, %c0_i32 : i32, i32
  }
}

</mosaic_0001>

<bundles_post_ra>
// kernel: encoder_block.1
= control target key start
LH: loop header
LB: loop body
LE: loop exit
PB: predicated region body
PF: predicated region fallthrough
CT: control target
= control target key end

     0   :  { %v218_v0 = vmov 0.0   ;;  %vm30_vm0 = vcmask 130048   ;;  %vm219_vm1 = vmmov 0   ;;  %s305_s1 = inlined_call_operand.vmem [shape: f32[16,128], index: 1, kind: input, shape index: {}]   ;;  %s306_s0 = inlined_call_operand.vmem [shape: f32[56,16], index: 0, kind: input, shape index: {}]   ;;  %s307_s2 = inlined_call_operand.vmem [shape: f32[1,128], index: 2, kind: input, shape index: {}]   ;;  %s308_s3 = inlined_call_operand.vmem [shape: f32[56,128], index: 3, kind: output, shape index: {}]  }
   0x1   :  { %187 = vmatprep.subr.mxu0 %v218_v0  ;;  %v22_v1 = vld [vmem:[%s305_s1 + $0x8] sm:$0xff]  ;;  %212 = vmatprep.subr.mxu1 %v218_v0  ;;  %v21_v2 = vld [vmem:[%s305_s1] sm:$0xff]  ;;  %v16_v7 = vld [vmem:[%s306_s0 + $0x10] sm:$0xff] }
   0x2   :  { %188 = vmatpush3.msra.mxu0 %v22_v1  ;;  %214 = vmatpush3.msra.mxu1 %v22_v1  ;;  %v14_v3 = vld [vmem:[%s306_s0] sm:$0xff]  ;;  %v15_v5 = vld [vmem:[%s306_s0 + $0x8] sm:$0xff]  ;;  %v20_v8 = vld [vmem:[%s306_s0 + $0x30] sm:$0xff] }
   0x3   :  { %189 = vmatprep.subr.mxu0 %v218_v0  ;;  %191 = vmatprep.mubr.msk.f32.mxu0 %vm219_vm1, %v218_v0  ;;  %v18_v4 = vld [vmem:[%s306_s0 + $0x20] sm:$0xff]  ;;  %v19_v6 = vld [vmem:[%s306_s0 + $0x28] sm:$0xff]  ;;  %v17_v9 = vld [vmem:[%s306_s0 + $0x18] sm:$0xff] }
   0x4   :  { %190 = vmatpush3.msra.mxu0 %v21_v2  ;;  %213 = vmatprep.subr.mxu1 %v218_v0  ;;  %v170_v10 = vld [vmem:[%s307_s2] ss:$0 sm:$0xff] }
   0x5   :  { %192 = vmatmul.mubr.msk.f32.vlgmr.msra.gmra.mxu0 %vm30_vm0, %v14_v3  ;;  %215 = vmatpush3.msra.mxu1 %v21_v2 }
   0x6   :  { %203 = vmatprep.mubr.msk.f32.mxu1 %vm219_vm1, %v218_v0  ;;  %194 = vmatprep.mubr.msk.f32.mxu0 %vm219_vm1, %v218_v0 }
   0x7   :  { %204 = vmatmul.mubr.msk.f32.vlgmr.msra.gmra.mxu1 %vm30_vm0, %v18_v4 }
   0x8   :  { %206 = vmatprep.mubr.msk.f32.mxu1 %vm219_vm1, %v218_v0 }
   0x9   :  { %195 = vmatmul.mubr.msk.f32.gmra.mxu0 %vm30_vm0, %v15_v5 }
   0xa   :  { %197 = vmatprep.mubr.msk.f32.mxu0 %vm219_vm1, %v218_v0 }
   0xb   :  { %207 = vmatmul.mubr.msk.f32.gmra.mxu1 %vm30_vm0, %v19_v6 }
   0xc   :  { %209 = vmatprep.mubr.msk.f32.mxu1 %vm219_vm1, %v218_v0 }
   0xd   :  { %198 = vmatmul.mubr.msk.f32.gmra.mxu0 %vm30_vm0, %v16_v7 }
   0xe   :  { %200 = vmatprep.mubr.msk.f32.mxu0 %vm219_vm1, %v218_v0 }
   0xf   :  { %210 = vmatmul.mubr.msk.f32.gmra.mxu1 %vm30_vm0, %v20_v8 }
  0x11   :  { %201 = vmatmul.mubr.msk.f32.gmra.mxu0 %vm30_vm0, %v17_v9 }
  0xc5   :  { %v118_v11 = vpop.f32.mrf.mxu0 }
  0xc6   :  { %v119_v12 = vadd.f32 %v170_v10, %v118_v11 }
  0xc7   :  { %v193_v13 = vpop.f32.mrf.mxu0  ;;  %v138_v14 = vpop.f32.mrf.mxu1 }
  0xc8   :  { %v152_v15 = vmax.f32 %v119_v12, 0.0  ;;  %v139_v16 = vadd.f32 %v170_v10, %v138_v14 }
  0xc9   :  { %v123_v17 = vpop.f32.mrf.mxu0  ;;  %v205_v18 = vpop.f32.mrf.mxu1 }
  0xca   :  { %159 = vst [vmem:[%s308_s3] sm:$0xff] %v152_v15  ;;  %v156_v19 = vmax.f32 %v139_v16, 0.0  ;;  %v124_v20 = vadd.f32 %v170_v10, %v123_v17 }
  0xcb   :  { %v196_v21 = vpop.f32.mrf.mxu0  ;;  %v143_v22 = vpop.f32.mrf.mxu1 }
  0xcc   :  { %163 = vst [vmem:[%s308_s3 + $0x20] sm:$0xff] %v156_v19  ;;  %v153_v23 = vmax.f32 %v124_v20, 0.0  ;;  %v144_v24 = vadd.f32 %v170_v10, %v143_v22 }
  0xcd   :  { %v128_v25 = vpop.f32.mrf.mxu0  ;;  %v208_v26 = vpop.f32.mrf.mxu1 }
  0xce   :  { %160 = vst [vmem:[%s308_s3 + $0x8] sm:$0xff] %v153_v23  ;;  %v157_v27 = vmax.f32 %v144_v24, 0.0  ;;  %v129_v28 = vadd.f32 %v170_v10, %v128_v25 }
  0xcf   :  { %v199_v29 = vpop.f32.mrf.mxu0  ;;  %v148_v30 = vpop.f32.mrf.mxu1 }
  0xd0   :  { %164 = vst [vmem:[%s308_s3 + $0x28] sm:$0xff] %v157_v27  ;;  %v154_v31 = vmax.f32 %v129_v28, 0.0  ;;  %v149_v32 = vadd.f32 %v170_v10, %v148_v30 }
  0xd1   :  { %v133_v33 = vpop.f32.mrf.mxu0  ;;  %v211_v34 = vpop.f32.mrf.mxu1 }
  0xd2   :  { %161 = vst [vmem:[%s308_s3 + $0x10] sm:$0xff] %v154_v31  ;;  %v158_v35 = vmax.f32 %v149_v32, 0.0  ;;  %v134_v36 = vadd.f32 %v170_v10, %v133_v33 }
  0xd3   :  { %v202_v37 = vpop.f32.mrf.mxu0 }
  0xd4   :  { %165 = vst [vmem:[%s308_s3 + $0x30] sm:$0xff] %v158_v35  ;;  %v155_v38 = vmax.f32 %v134_v36, 0.0 }
  0xd6   :  { %162 = vst [vmem:[%s308_s3 + $0x18] sm:$0xff] %v155_v38 }

</bundles_post_ra>
